<compile_context>
chip_gen: v5e
topology: v5e:2x2
jax: 0.10.0
libtpu: 0.0.40
codegen_flags: <defaults>
</compile_context>

<pallas_src>
import functools

import jax
import jax.numpy as jnp
from jax.experimental import pallas as pl
from jax.experimental.pallas import tpu as pltpu

H1, H2, H3 = 256, 128, 64
LANE = 128
SUBLANE = 8


def _round_up(n, m):
    return (n + m - 1) // m * m


def _mlp_kernel(x_ref,
                w1_ref, b1_ref,
                w2_ref, b2_ref,
                w3_ref, b3_ref,
                w4_ref, b4_ref,
                o_ref):
    # Fused 4-layer MLP on one batch tile. Matmuls hit the MXU with f32
    # accumulation; bias add / ReLU run on the VPU.
    cdt = w1_ref.dtype  # compute (matmul input) dtype, e.g. bf16

    h = jnp.dot(x_ref[...], w1_ref[...],
                preferred_element_type=jnp.float32) + b1_ref[...]
    h = jnp.maximum(h, 0.0).astype(cdt)

    h = jnp.dot(h, w2_ref[...],
                preferred_element_type=jnp.float32) + b2_ref[...]
    h = jnp.maximum(h, 0.0).astype(cdt)

    h = jnp.dot(h, w3_ref[...],
                preferred_element_type=jnp.float32) + b3_ref[...]
    h = jnp.maximum(h, 0.0).astype(cdt)

    o = jnp.dot(h, w4_ref[...],
                preferred_element_type=jnp.float32) + b4_ref[...]
    o_ref[...] = o.astype(o_ref.dtype)


@functools.partial(jax.jit, static_argnames=("batch_tile", "compute_dtype"))
def dnn_model_forward(x, params, *, batch_tile=256, compute_dtype=jnp.bfloat16):
    """x: (B, input_size) float32; params: w1..w4 of shape (in, out), b1..b4 of shape (1, out)."""
    B, input_size = x.shape
    output_size = params["w4"].shape[1]

    # Clamp tile to the (sublane-rounded) batch so small batches don't over-pad.
    bt = min(batch_tile, _round_up(B, SUBLANE))
    bt = max(SUBLANE, _round_up(bt, SUBLANE))

    # ---- exact zero-padding for lane-dense MXU tiles and unmasked stores ----
    h3_pad = _round_up(H3, LANE)             # 64 -> 128  (fc3 out / fc4 in)
    out_pad = _round_up(output_size, LANE)   # e.g. 8 -> 128 (dense output vst)
    b_pad = _round_up(B, bt)                 # batch rounded up to tile

    cdt = compute_dtype
    xp = jnp.pad(x, ((0, b_pad - B), (0, 0))).astype(cdt)
    w1 = params["w1"].astype(cdt)
    w2 = params["w2"].astype(cdt)
    w3 = jnp.pad(params["w3"], ((0, 0), (0, h3_pad - H3))).astype(cdt)
    w4 = jnp.pad(params["w4"],
                 ((0, h3_pad - H3), (0, out_pad - output_size))).astype(cdt)
    # Biases stay f32 and are added to the f32 accumulator.
    b1 = params["b1"].astype(jnp.float32)
    b2 = params["b2"].astype(jnp.float32)
    b3 = jnp.pad(params["b3"], ((0, 0), (0, h3_pad - H3))).astype(jnp.float32)
    b4 = jnp.pad(params["b4"],
                 ((0, 0), (0, out_pad - output_size))).astype(jnp.float32)

    grid = (b_pad // bt,)
    # Weights + biases total < ~300 KB even double-buffered, and the x/out
    # tiles are small, so the default scoped-VMEM limit is ample on v5e/v6e/v7x.

    out = pl.pallas_call(
        _mlp_kernel,
        out_shape=jax.ShapeDtypeStruct((b_pad, out_pad), jnp.float32),
        grid_spec=pltpu.PrefetchScalarGridSpec(
            num_scalar_prefetch=0,
            grid=grid,
            in_specs=[
                pl.BlockSpec((bt, input_size), lambda i: (i, 0)),    # x tile
                pl.BlockSpec((input_size, H1), lambda i: (0, 0)),    # w1
                pl.BlockSpec((1, H1), lambda i: (0, 0)),             # b1
                pl.BlockSpec((H1, H2), lambda i: (0, 0)),            # w2
                pl.BlockSpec((1, H2), lambda i: (0, 0)),             # b2
                pl.BlockSpec((H2, h3_pad), lambda i: (0, 0)),        # w3 (padded)
                pl.BlockSpec((1, h3_pad), lambda i: (0, 0)),         # b3 (padded)
                pl.BlockSpec((h3_pad, out_pad), lambda i: (0, 0)),   # w4 (padded)
                pl.BlockSpec((1, out_pad), lambda i: (0, 0)),        # b4 (padded)
            ],
            out_specs=pl.BlockSpec((bt, out_pad), lambda i: (i, 0)),
        ),
        compiler_params=pltpu.CompilerParams(
            dimension_semantics=("parallel",),  # batch tiles are independent
        ),
    )(xp, w1, b1, w2, b2, w3, b3, w4, b4)

    return out[:B, :output_size]


def init_params(key, input_size, output_size):
    """Deterministic init mimicking nn.Linear's U(-1/sqrt(fan_in), 1/sqrt(fan_in))."""
    dims = [(input_size, H1), (H1, H2), (H2, H3), (H3, output_size)]
    params = {}
    for idx, (fan_in, fan_out) in enumerate(dims, start=1):
        key, kw, kb = jax.random.split(key, 3)
        bound = 1.0 / jnp.sqrt(jnp.float32(fan_in))
        params[f"w{idx}"] = jax.random.uniform(
            kw, (fan_in, fan_out), jnp.float32, -bound, bound)
        params[f"b{idx}"] = jax.random.uniform(
            kb, (1, fan_out), jnp.float32, -bound, bound)
    return params


def reference_forward(x, params):
    h = jnp.maximum(x @ params["w1"] + params["b1"], 0.0)
    h = jnp.maximum(h @ params["w2"] + params["b2"], 0.0)
    h = jnp.maximum(h @ params["w3"] + params["b3"], 0.0)
    return h @ params["w4"] + params["b4"]


if __name__ == "__main__":
    key = jax.random.PRNGKey(0)
    # Shapes consistent with the module; B=512 with batch_tile=256 gives a
    # 2-step "parallel" grid (fills MXU M-dim, keeps both v7x TCs busy).
    B, input_size, output_size = 512, 32, 8

    kx, kp = jax.random.split(key)
    x = jax.random.normal(kx, (B, input_size), jnp.float32)
    params = init_params(kp, input_size, output_size)

    ref = reference_forward(x, params)

    # Default bf16 compute path (f32 MXU accumulation) — loose tolerance.
    out_bf16 = jax.block_until_ready(dnn_model_forward(x, params))
    assert out_bf16.shape == (B, output_size)
    assert jnp.allclose(out_bf16, ref, atol=5e-2, rtol=5e-2), \
        "bf16 kernel mismatch vs JAX reference"

    # f32 compute path — tight numerical check.
    out_f32 = jax.block_until_ready(
        dnn_model_forward(x, params, compute_dtype=jnp.float32))
    assert out_f32.shape == (B, output_size)
    assert jnp.allclose(out_f32, ref, atol=1e-4, rtol=1e-4), \
        "f32 kernel mismatch vs JAX reference"

    print("KERNEL_OK")
</pallas_src>

<mosaic_0001>
module attributes {stable_mosaic.version = 11 : i64} {
  func.func @_mlp_kernel(%arg0: i32, %arg1: memref<256x32xbf16, #tpu.memory_space<vmem>>, %arg2: memref<32x256xbf16, #tpu.memory_space<vmem>>, %arg3: memref<1x256xf32, #tpu.memory_space<vmem>>, %arg4: memref<256x128xbf16, #tpu.memory_space<vmem>>, %arg5: memref<1x128xf32, #tpu.memory_space<vmem>>, %arg6: memref<128x128xbf16, #tpu.memory_space<vmem>>, %arg7: memref<1x128xf32, #tpu.memory_space<vmem>>, %arg8: memref<128x128xbf16, #tpu.memory_space<vmem>>, %arg9: memref<1x128xf32, #tpu.memory_space<vmem>>, %arg10: memref<256x128xf32, #tpu.memory_space<vmem>>) attributes {dimension_semantics = [#tpu.dimension_semantics<parallel>], iteration_bounds = array<i64: 2>, scalar_prefetch = 0 : i64, scratch_operands = 0 : i64, tpu.core_type = #tpu.core_type<tc>, window_params = [{transform_indices = @transform_0, window_bounds = array<i64: 256, 32>}, {pipeline_mode = #tpu.pipeline_mode<synchronous>, transform_indices = @transform_1, window_bounds = array<i64: 32, 256>}, {pipeline_mode = #tpu.pipeline_mode<synchronous>, transform_indices = @transform_2, window_bounds = array<i64: 1, 256>}, {pipeline_mode = #tpu.pipeline_mode<synchronous>, transform_indices = @transform_3, window_bounds = array<i64: 256, 128>}, {pipeline_mode = #tpu.pipeline_mode<synchronous>, transform_indices = @transform_4, window_bounds = array<i64: 1, 128>}, {pipeline_mode = #tpu.pipeline_mode<synchronous>, transform_indices = @transform_5, window_bounds = array<i64: 128, 128>}, {pipeline_mode = #tpu.pipeline_mode<synchronous>, transform_indices = @transform_6, window_bounds = array<i64: 1, 128>}, {pipeline_mode = #tpu.pipeline_mode<synchronous>, transform_indices = @transform_7, window_bounds = array<i64: 128, 128>}, {pipeline_mode = #tpu.pipeline_mode<synchronous>, transform_indices = @transform_8, window_bounds = array<i64: 1, 128>}, {transform_indices = @transform_9, window_bounds = array<i64: 256, 128>}]} {
    %c0 = arith.constant 0 : index
    %c0_0 = arith.constant 0 : index
    %0 = vector.load %arg1[%c0, %c0_0] : memref<256x32xbf16, #tpu.memory_space<vmem>>, vector<256x32xbf16>
    %c0_1 = arith.constant 0 : index
    %c0_2 = arith.constant 0 : index
    %1 = vector.load %arg2[%c0_1, %c0_2] : memref<32x256xbf16, #tpu.memory_space<vmem>>, vector<32x256xbf16>
    %cst = arith.constant dense<0.000000e+00> : vector<256x256xf32>
    %2 = tpu.matmul %0, %1, %cst {dimension_numbers = #tpu.dot_dimension_numbers<[1], [0], [0], [1], [0, 0, 1, 1], [], []>} : vector<256x32xbf16>, vector<32x256xbf16>, vector<256x256xf32> -> vector<256x256xf32>
    %c0_3 = arith.constant 0 : index
    %c0_4 = arith.constant 0 : index
    %3 = vector.load %arg3[%c0_3, %c0_4] : memref<1x256xf32, #tpu.memory_space<vmem>>, vector<1x256xf32>
    %4 = vector.broadcast %3 : vector<1x256xf32> to vector<256x256xf32>
    %5 = arith.addf %2, %4 : vector<256x256xf32>
    %cst_5 = arith.constant 0.000000e+00 : f32
    %6 = vector.broadcast %cst_5 : f32 to vector<256x256xf32>
    %7 = arith.maximumf %5, %6 : vector<256x256xf32>
    %8 = arith.truncf %7 : vector<256x256xf32> to vector<256x256xbf16>
    %c0_6 = arith.constant 0 : index
    %c0_7 = arith.constant 0 : index
    %9 = vector.load %arg4[%c0_6, %c0_7] : memref<256x128xbf16, #tpu.memory_space<vmem>>, vector<256x128xbf16>
    %cst_8 = arith.constant dense<0.000000e+00> : vector<256x128xf32>
    %10 = tpu.matmul %8, %9, %cst_8 {dimension_numbers = #tpu.dot_dimension_numbers<[1], [0], [0], [1], [0, 0, 1, 1], [], []>} : vector<256x256xbf16>, vector<256x128xbf16>, vector<256x128xf32> -> vector<256x128xf32>
    %c0_9 = arith.constant 0 : index
    %c0_10 = arith.constant 0 : index
    %11 = vector.load %arg5[%c0_9, %c0_10] : memref<1x128xf32, #tpu.memory_space<vmem>>, vector<1x128xf32>
    %12 = vector.broadcast %11 : vector<1x128xf32> to vector<256x128xf32>
    %13 = arith.addf %10, %12 : vector<256x128xf32>
    %cst_11 = arith.constant 0.000000e+00 : f32
    %14 = vector.broadcast %cst_11 : f32 to vector<256x128xf32>
    %15 = arith.maximumf %13, %14 : vector<256x128xf32>
    %16 = arith.truncf %15 : vector<256x128xf32> to vector<256x128xbf16>
    %c0_12 = arith.constant 0 : index
    %c0_13 = arith.constant 0 : index
    %17 = vector.load %arg6[%c0_12, %c0_13] : memref<128x128xbf16, #tpu.memory_space<vmem>>, vector<128x128xbf16>
    %cst_14 = arith.constant dense<0.000000e+00> : vector<256x128xf32>
    %18 = tpu.matmul %16, %17, %cst_14 {dimension_numbers = #tpu.dot_dimension_numbers<[1], [0], [0], [1], [0, 0, 1, 1], [], []>} : vector<256x128xbf16>, vector<128x128xbf16>, vector<256x128xf32> -> vector<256x128xf32>
    %c0_15 = arith.constant 0 : index
    %c0_16 = arith.constant 0 : index
    %19 = vector.load %arg7[%c0_15, %c0_16] : memref<1x128xf32, #tpu.memory_space<vmem>>, vector<1x128xf32>
    %20 = vector.broadcast %19 : vector<1x128xf32> to vector<256x128xf32>
    %21 = arith.addf %18, %20 : vector<256x128xf32>
    %cst_17 = arith.constant 0.000000e+00 : f32
    %22 = vector.broadcast %cst_17 : f32 to vector<256x128xf32>
    %23 = arith.maximumf %21, %22 : vector<256x128xf32>
    %24 = arith.truncf %23 : vector<256x128xf32> to vector<256x128xbf16>
    %c0_18 = arith.constant 0 : index
    %c0_19 = arith.constant 0 : index
    %25 = vector.load %arg8[%c0_18, %c0_19] : memref<128x128xbf16, #tpu.memory_space<vmem>>, vector<128x128xbf16>
    %cst_20 = arith.constant dense<0.000000e+00> : vector<256x128xf32>
    %26 = tpu.matmul %24, %25, %cst_20 {dimension_numbers = #tpu.dot_dimension_numbers<[1], [0], [0], [1], [0, 0, 1, 1], [], []>} : vector<256x128xbf16>, vector<128x128xbf16>, vector<256x128xf32> -> vector<256x128xf32>
    %c0_21 = arith.constant 0 : index
    %c0_22 = arith.constant 0 : index
    %27 = vector.load %arg9[%c0_21, %c0_22] : memref<1x128xf32, #tpu.memory_space<vmem>>, vector<1x128xf32>
    %28 = vector.broadcast %27 : vector<1x128xf32> to vector<256x128xf32>
    %29 = arith.addf %26, %28 : vector<256x128xf32>
    %c0_23 = arith.constant 0 : index
    %c0_24 = arith.constant 0 : index
    %30 = vector.load %arg10[%c0_23, %c0_24] : memref<256x128xf32, #tpu.memory_space<vmem>>, vector<256x128xf32>
    tpu.vector_store %arg10[%c0_23, %c0_24], %29 {strides = array<i32>} : memref<256x128xf32, #tpu.memory_space<vmem>>, vector<256x128xf32>,
    return
  }
  func.func @transform_0(%arg0: i32) -> (i32, i32) {
    %c0_i32 = arith.constant 0 : i32
    %c0_i32_0 = arith.constant 0 : i32
    return %arg0, %c0_i32 : i32, i32
  }
  func.func @transform_1(%arg0: i32) -> (i32, i32) {
    %c0_i32 = arith.constant 0 : i32
    %c0_i32_0 = arith.constant 0 : i32
    %c0_i32_1 = arith.constant 0 : i32
    return %c0_i32, %c0_i32_0 : i32, i32
  }
  func.func @transform_2(%arg0: i32) -> (i32, i32) {
    %c0_i32 = arith.constant 0 : i32
    %c0_i32_0 = arith.constant 0 : i32
    %c0_i32_1 = arith.constant 0 : i32
    return %c0_i32, %c0_i32_0 : i32, i32
  }
  func.func @transform_3(%arg0: i32) -> (i32, i32) {
    %c0_i32 = arith.constant 0 : i32
    %c0_i32_0 = arith.constant 0 : i32
    %c0_i32_1 = arith.constant 0 : i32
    return %c0_i32, %c0_i32_0 : i32, i32
  }
  func.func @transform_4(%arg0: i32) -> (i32, i32) {
    %c0_i32 = arith.constant 0 : i32
    %c0_i32_0 = arith.constant 0 : i32
    %c0_i32_1 = arith.constant 0 : i32
    return %c0_i32, %c0_i32_0 : i32, i32
  }
  func.func @transform_5(%arg0: i32) -> (i32, i32) {
    %c0_i32 = arith.constant 0 : i32
    %c0_i32_0 = arith.constant 0 : i32
    %c0_i32_1 = arith.constant 0 : i32
    return %c0_i32, %c0_i32_0 : i32, i32
  }
  func.func @transform_6(%arg0: i32) -> (i32, i32) {
    %c0_i32 = arith.constant 0 : i32
    %c0_i32_0 = arith.constant 0 : i32
    %c0_i32_1 = arith.constant 0 : i32
    return %c0_i32, %c0_i32_0 : i32, i32
  }
  func.func @transform_7(%arg0: i32) -> (i32, i32) {
    %c0_i32 = arith.constant 0 : i32
    %c0_i32_0 = arith.constant 0 : i32
    %c0_i32_1 = arith.constant 0 : i32
    return %c0_i32, %c0_i32_0 : i32, i32
  }
  func.func @transform_8(%arg0: i32) -> (i32, i32) {
    %c0_i32 = arith.constant 0 : i32
    %c0_i32_0 = arith.constant 0 : i32
    %c0_i32_1 = arith.constant 0 : i32
    return %c0_i32, %c0_i32_0 : i32, i32
  }
  func.func @transform_9(%arg0: i32) -> (i32, i32) {
    %c0_i32 = arith.constant 0 : i32
    %c0_i32_0 = arith.constant 0 : i32
    return %arg0, %c0_i32 : i32, i32
  }
}

</mosaic_0001>

<bundles_post_ra>
// kernel: dnn_model_forward.1
= control target key start
LH: loop header
LB: loop body
LE: loop exit
PB: predicated region body
PF: predicated region fallthrough
CT: control target
= control target key end

     0   :  { %s1994_s30 = smov 0   ;;  %s2471_s0 = inlined_call_operand.vmem [shape: bf16[512,32], index: 0, kind: input, shape index: {}]   ;;  %s2472_s1 = inlined_call_operand.vmem [shape: bf16[32,256], index: 1, kind: input, shape index: {}]   ;;  %s2473_s2 = inlined_call_operand.vmem [shape: f32[1,256], index: 2, kind: input, shape index: {}]   ;;  %s2474_s3 = inlined_call_operand.vmem [shape: bf16[256,128], index: 3, kind: input, shape index: {}]   ;;  %s2475_s4 = inlined_call_operand.vmem [shape: f32[1,128], index: 4, kind: input, shape index: {}]   ;;  %s2476_s5 = inlined_call_operand.vmem [shape: bf16[128,128], index: 5, kind: input, shape index: {}]   ;;  %s2477_s6 = inlined_call_operand.vmem [shape: f32[1,128], index: 6, kind: input, shape index: {}]   ;;  %s2478_s7 = inlined_call_operand.vmem [shape: bf16[128,128], index: 7, kind: input, shape index: {}]   ;;  %s2479_s8 = inlined_call_operand.vmem [shape: f32[1,128], index: 8, kind: input, shape index: {}]   ;;  %s2480_s9 = inlined_call_operand.vmem [shape: f32[512,128], index: 9, kind: output, shape index: {}]  }
   0x1 LB: > { %s1610_s10 = sadd.s32 4294967295, %s1942_s30   ;;  %p1614_p0 = scmp.ge.s32.totalorder %s1942_s30, 1  ;;  %s1942_s30 = sphi %s1994_s30, %s19_s30  }
   0x2   : > { %p288_p1 = scmp.lt.s32.totalorder %s1942_s30, 3 }
   0x4   : > { %p289_p2 = pnand %p1614_p0, %p288_p1 }
   0x5   : > { %s1615_s27 = sshll.u32 (!%p289_p2), %s1610_s10, 5 }
   0x6   : > { %292 = sbr.rel (%p289_p2) target bundleno = 832 (0x340), region = 56  ;;  %p325_p3 = scmp.lt.s32.totalorder (!%p289_p2), %s1615_s27, 63 }
   0xb   : > { %v1693_v0 = vld [vmem:[%s2472_s1 + $0x10] sm:$0xf]  ;;  %v1880_v1 = vld [vmem:[%s2472_s1 + $0x14] sm:$0xf0]  ;;  %v1879_v2 = vld [vmem:[%s2472_s1 + $0x14] sm:$0xf] }
   0xc   : > { %v1694_v3 = vor.u32 %v1880_v1, %v1693_v0  ;;  %v1695_v4 = vld [vmem:[%s2472_s1 + $0x18] sm:$0xf0]  ;;  %v1685_v5 = vld [vmem:[%s2472_s1] sm:$0xf]  ;;  %v1878_v6 = vld [vmem:[%s2472_s1 + $0x4] sm:$0xf0] }
   0xd   : > { %v1698_v7 = vor.u32 %v1879_v2, %v1695_v4  ;;  %v1877_v8 = vld [vmem:[%s2472_s1 + $0x4] sm:$0xf]  ;;  %v1687_v9 = vld [vmem:[%s2472_s1 + $0x8] sm:$0xf0]  ;;  %v1686_v10 = vor.u32 %v1878_v6, %v1685_v5  ;;  %s2482_s27 = smov (!%p325_p3, %s1615_s27), 63  ;;  %v1896_v12 = vld [vmem:[%s2474_s3 + $0x78] sm:$0xff] }
   0xe   : > { %534 = vmatpush.bf16.msra.mxu0 %v1694_v3  ;;  %1913 = vmatpush.bf16.msra.mxu2 %v1694_v3  ;;  %v1690_v11 = vor.u32 %v1877_v8, %v1687_v9  ;;  %v1888_v13 = vld [vmem:[%s2474_s3 + $0x38] sm:$0xff]  ;;  %s1616_s10 = sshll.u32 %s2482_s27, 2  ;;  %vm479_vm0 = vcmask 261120   ;;  %v1895_v16 = vld [vmem:[%s2474_s3 + $0x70] sm:$0xff]  ;;  %v1894_v19 = vld [vmem:[%s2474_s3 + $0x68] sm:$0xff]  ;;  %s1618_s26 = sshll.u32 %s2482_s27, 3 }
   0xf   : > { %623 = vmatpush.bf16.msra.mxu1 %v1698_v7  ;;  %1915 = vmatpush.bf16.msra.mxu3 %v1698_v7  ;;  %s2038_s15 = scalar_lea.vmem %s2471_s0, %s1616_s10  ;;  %v1887_v18 = vld [vmem:[%s2474_s3 + $0x30] sm:$0xff]  ;;  %v1886_v22 = vld [vmem:[%s2474_s3 + $0x28] sm:$0xff]  ;;  %v1893_v23 = vld [vmem:[%s2474_s3 + $0x60] sm:$0xff]  ;;  %s2388_s12 = scalar_lea.vmem %s2480_s9, %s1618_s26 }
  0x10   : > { %v1861_v14 = vld [vmem:[%s2038_s15] sm:$0xff]  ;;  %v1870_v17 = vld [vmem:[%s2038_s15 + $0x48] sm:$0xff]  ;;  %v1871_v21 = vld [vmem:[%s2038_s15 + $0x50] sm:$0xff] }
  0x11   : > { %v2042_v15 = vld [vmem:[%s2038_s15 + $0x40] sm:$0xff]  ;;  %v1862_v20 = vld [vmem:[%s2038_s15 + $0x8] sm:$0xff]  ;;  %v1863_v24 = vld [vmem:[%s2038_s15 + $0x10] sm:$0xff] }
  0x12   : > { %535 = vmatpush.bf16.msra.mxu0 %v1686_v10  ;;  %1914 = vmatpush.bf16.msra.mxu2 %v1686_v10  ;;  %v1872_v25 = vld [vmem:[%s2038_s15 + $0x58] sm:$0xff]  ;;  %v1885_v26 = vld [vmem:[%s2474_s3 + $0x20] sm:$0xff]  ;;  %v1891_v31 = vld [vmem:[%s2474_s3 + $0x50] sm:$0xff] }
  0x13   : > { %624 = vmatpush.bf16.msra.mxu1 %v1690_v11  ;;  %1916 = vmatpush.bf16.msra.mxu3 %v1690_v11  ;;  %v1892_v27 = vld [vmem:[%s2474_s3 + $0x58] sm:$0xff]  ;;  %v1873_v29 = vld [vmem:[%s2038_s15 + $0x60] sm:$0xff]  ;;  %v1874_v33 = vld [vmem:[%s2038_s15 + $0x68] sm:$0xff] }
  0x14   : > { %v1864_v28 = vld [vmem:[%s2038_s15 + $0x18] sm:$0xff]  ;;  %v1865_v32 = vld [vmem:[%s2038_s15 + $0x20] sm:$0xff]  ;;  %v1883_v34 = vld [vmem:[%s2474_s3 + $0x10] sm:$0xff] }
  0x15   : > { %1699 = vmatmul.msk.bf16.vlgmr.msra.gmra.mxu0 %vm479_vm0, %v1861_v14  ;;  %1708 = vmatmul.msk.bf16.vlgmr.msra.gmra.mxu2 %vm479_vm0, %v1870_v17  ;;  %v1884_v30 = vld [vmem:[%s2474_s3 + $0x18] sm:$0xff]  ;;  %v1890_v35 = vld [vmem:[%s2474_s3 + $0x48] sm:$0xff]  ;;  %v1875_v37 = vld [vmem:[%s2038_s15 + $0x70] sm:$0xff] }
  0x16   : > { %934 = vmatpush.bf16.msrb.mxu2 %v1888_v13  ;;  %1715 = vmatmul.msk.bf16.vlgmr.msra.gmra.mxu1 %vm479_vm0, %v1861_v14  ;;  %v1866_v36 = vld [vmem:[%s2038_s15 + $0x28] sm:$0xff]  ;;  %v1867_v39 = vld [vmem:[%s2038_s15 + $0x30] sm:$0xff]  ;;  %v1876_v40 = vld [vmem:[%s2038_s15 + $0x78] sm:$0xff] }
  0x17   : > { %1023 = vmatpush.bf16.msrb.mxu3 %v1896_v12  ;;  %v1882_v38 = vld [vmem:[%s2474_s3 + $0x8] sm:$0xff]  ;;  %v1881_v41 = vld [vmem:[%s2474_s3] sm:$0xff]  ;;  %v1868_v43 = vld [vmem:[%s2038_s15 + $0x38] sm:$0xff] }
  0x18   : > { %1723 = vmatmul.msk.bf16.vlgmr.msra.gmra.mxu3 %vm479_vm0, %v2042_v15  ;;  %v1889_v42 = vld [vmem:[%s2474_s3 + $0x40] sm:$0xff]  ;;  %v1904_v44 = vld [vmem:[%s2476_s5 + $0x38] sm:$0xff]  ;;  %v1903_v62 = vld [vmem:[%s2476_s5 + $0x30] sm:$0xff] }
  0x19   : > { %1228 = vmatpush.bf16.msrb.mxu0 %v1904_v44  ;;  %v373_v45 = vld [vmem:[%s2473_s2] sm:$0x3] }
  0x1a   : > { %935 = vmatpush.bf16.msrb.mxu2 %v1887_v18  ;;  %v2138_v48 = vperm.slane %v373_v45, 0  ;;  %v2140_v49 = vperm.slane %v373_v45, 1 }
  0x1b   : > { %1024 = vmatpush.bf16.msrb.mxu3 %v1895_v16 }
  0x1d   : > { %1229 = vmatpush.bf16.msrb.mxu0 %v1903_v62 }
  0x1e   : > { %936 = vmatpush.bf16.msrb.mxu2 %v1886_v22  ;;  %v1902_v22 = vld [vmem:[%s2476_s5 + $0x28] sm:$0xff] }
  0x1f   : > { %1025 = vmatpush.bf16.msrb.mxu3 %v1894_v19 }
  0x21   : > { %1230 = vmatpush.bf16.msrb.mxu0 %v1902_v22 }
  0x22   : > { %937 = vmatpush.bf16.msrb.mxu2 %v1885_v26 }
  0x23   : > { %1026 = vmatpush.bf16.msrb.mxu3 %v1893_v23 }
  0x25   : > { %1700 = vmatmul.msk.bf16.gmra.mxu0 %vm479_vm0, %v1862_v20  ;;  %1709 = vmatmul.msk.bf16.gmra.mxu2 %vm479_vm0, %v1871_v21 }
  0x26   : > { %1716 = vmatmul.msk.bf16.gmra.mxu1 %vm479_vm0, %v1862_v20  ;;  %938 = vmatpush.bf16.msrb.mxu2 %v1884_v30 }
  0x27   : > { %1027 = vmatpush.bf16.msrb.mxu3 %v1892_v27 }
  0x28   : > { %1724 = vmatmul.msk.bf16.gmra.mxu3 %vm479_vm0, %v1870_v17 }
  0x2a   : > { %939 = vmatpush.bf16.msrb.mxu2 %v1883_v34 }
  0x2b   : > { %1028 = vmatpush.bf16.msrb.mxu3 %v1891_v31 }
  0x2e   : > { %940 = vmatpush.bf16.msrb.mxu2 %v1882_v38 }
  0x2f   : > { %1029 = vmatpush.bf16.msrb.mxu3 %v1890_v35 }
  0x32   : > { %941 = vmatpush.bf16.msrb.mxu2 %v1881_v41 }
  0x33   : > { %1030 = vmatpush.bf16.msrb.mxu3 %v1889_v42 }
  0x35   : > { %1701 = vmatmul.msk.bf16.gmra.mxu0 %vm479_vm0, %v1863_v24  ;;  %1710 = vmatmul.msk.bf16.gmra.mxu2 %vm479_vm0, %v1872_v25 }
  0x36   : > { %1717 = vmatmul.msk.bf16.gmra.mxu1 %vm479_vm0, %v1863_v24  ;;  %1917 = vmatpush.bf16.msra.mxu2 %v1904_v44 }
  0x38   : > { %1725 = vmatmul.msk.bf16.gmra.mxu3 %vm479_vm0, %v1871_v21 }
  0x3a   : > { %1918 = vmatpush.bf16.msra.mxu2 %v1903_v62 }
  0x3e   : > { %1919 = vmatpush.bf16.msra.mxu2 %v1902_v22 }
  0x45   : > { %1702 = vmatmul.msk.bf16.gmra.mxu0 %vm479_vm0, %v1864_v28  ;;  %1711 = vmatmul.msk.bf16.gmra.mxu2 %vm479_vm0, %v1873_v29 }
  0x46   : > { %1718 = vmatmul.msk.bf16.gmra.mxu1 %vm479_vm0, %v1864_v28 }
  0x48   : > { %1726 = vmatmul.msk.bf16.gmra.mxu3 %vm479_vm0, %v1872_v25 }
  0x55   : > { %1703 = vmatmul.msk.bf16.gmra.mxu0 %vm479_vm0, %v1865_v32  ;;  %1712 = vmatmul.msk.bf16.gmra.mxu2 %vm479_vm0, %v1874_v33 }
  0x56   : > { %1719 = vmatmul.msk.bf16.gmra.mxu1 %vm479_vm0, %v1865_v32 }
  0x58   : > { %1727 = vmatmul.msk.bf16.gmra.mxu3 %vm479_vm0, %v1873_v29 }
  0x65   : > { %1704 = vmatmul.msk.bf16.gmra.mxu0 %vm479_vm0, %v1866_v36  ;;  %1713 = vmatmul.msk.bf16.gmra.mxu2 %vm479_vm0, %v1875_v37 }
  0x66   : > { %1720 = vmatmul.msk.bf16.gmra.mxu1 %vm479_vm0, %v1866_v36 }
  0x68   : > { %1728 = vmatmul.msk.bf16.gmra.mxu3 %vm479_vm0, %v1874_v33 }
  0x75   : > { %1705 = vmatmul.msk.bf16.gmra.mxu0 %vm479_vm0, %v1867_v39  ;;  %1714 = vmatmul.msk.bf16.gmra.mxu2 %vm479_vm0, %v1876_v40 }
  0x76   : > { %1721 = vmatmul.msk.bf16.gmra.mxu1 %vm479_vm0, %v1867_v39 }
  0x78   : > { %1729 = vmatmul.msk.bf16.gmra.mxu3 %vm479_vm0, %v1875_v37 }
  0x85   : > { %1706 = vmatmul.msk.bf16.gmra.mxu0 %vm479_vm0, %v1868_v43 }
  0x86   : > { %1722 = vmatmul.msk.bf16.gmra.mxu1 %vm479_vm0, %v1868_v43 }
  0x88   : > { %1730 = vmatmul.msk.bf16.gmra.mxu3 %vm479_vm0, %v1876_v40 }
  0x92   : > { %v537_v46 = vpop.f32.mrf.mxu0 }
  0x93   : > { %v626_v47 = vpop.f32.mrf.mxu1  ;;  %v538_v50 = vadd.f32 %v537_v46, %v2138_v48 }
  0x94   : > { %v627_v51 = vadd.f32 %v626_v47, %v2140_v49 }
  0x95   : > { %1707 = vmatmul.msk.bf16.gmra.mxu0 %vm479_vm0, %v2042_v15  ;;  %v706_v58 = vmax.f32 %v538_v50, 0.0 }
  0x96   : > { %v707_v59 = vmax.f32 %v627_v51, 0.0 }
  0x98   : > { %v2146_v53 = vpop.f32.mrf.mxu2 }
  0x9a   : > { %v539_v54 = vpop.f32.mrf.mxu0 }
  0x9b   : > { %v666_v52 = vpop.f32.mrf.mxu3  ;;  %v628_v55 = vpop.f32.mrf.mxu1  ;;  %v540_v56 = vadd.f32 %v539_v54, %v2138_v48 }
  0x9c   : > { %v629_v57 = vadd.f32 %v628_v55, %v2140_v49  ;;  %v667_v63 = vadd.f32 %v666_v52, %v2140_v49  ;;  %v1901_v52 = vld [vmem:[%s2476_s5 + $0x20] sm:$0xff] }
  0x9d   : > { %v708_v60 = vmax.f32 %v540_v56, 0.0  ;;  %1231 = vmatpush.bf16.msrb.mxu0 %v1901_v52  ;;  %1920 = vmatpush.bf16.msra.mxu2 %v1901_v52 }
  0x9e   : > { %v709_v61 = vmax.f32 %v629_v57, 0.0  ;;  %v739_v3 = vmax.f32 %v667_v63, 0.0 }
  0x9f   : > { %v770_v0 = vpack.c.bf16 %v708_v60, %v706_v58 }
  0xa0   : > { %v771_v1 = vpack.c.bf16 %v709_v61, %v707_v59  ;;  %v2155_v7 = vpop.f32.mrf.mxu2 }
  0xa1   : > { %942 = vmatmul.bf16.vlgmr.msrb.gmra.mxu2 %v770_v0 }
  0xa2   : > { %1031 = vmatmul.bf16.vlgmr.msrb.gmra.mxu3 %v771_v1  ;;  %v542_v4 = vpop.f32.mrf.mxu0 }
  0xa3   : > { %v668_v2 = vpop.f32.mrf.mxu3  ;;  %v631_v5 = vpop.f32.mrf.mxu1  ;;  %v543_v10 = vadd.f32 %v542_v4, %v2138_v48 }
  0xa4   : > { %v669_v6 = vadd.f32 %v668_v2, %v2140_v49  ;;  %v632_v11 = vadd.f32 %v631_v5, %v2140_v49 }
  0xa5   : > { %v710_v17 = vmax.f32 %v543_v10, 0.0 }
  0xa6   : > { %v741_v8 = vmax.f32 %v669_v6, 0.0  ;;  %v711_v18 = vmax.f32 %v632_v11, 0.0 }
  0xa8   : > { %v2157_v9 = vpack.c.bf16 %v741_v8, %v739_v3  ;;  %v2163_v21 = vpop.f32.mrf.mxu2 }
  0xaa   : > { %v544_v13 = vpop.f32.mrf.mxu0 }
  0xab   : > { %v671_v12 = vpop.f32.mrf.mxu3  ;;  %v633_v14 = vpop.f32.mrf.mxu1  ;;  %v545_v15 = vadd.f32 %v544_v13, %v2138_v48 }
  0xac   : > { %v634_v16 = vadd.f32 %v633_v14, %v2140_v49  ;;  %v672_v23 = vadd.f32 %v671_v12, %v2140_v49 }
  0xad   : > { %v712_v19 = vmax.f32 %v545_v15, 0.0 }
  0xae   : > { %v713_v20 = vmax.f32 %v634_v16, 0.0  ;;  %v743_v27 = vmax.f32 %v672_v23, 0.0 }
  0xaf   : > { %v772_v24 = vpack.c.bf16 %v712_v19, %v710_v17 }
  0xb0   : > { %v773_v25 = vpack.c.bf16 %v713_v20, %v711_v18  ;;  %v2172_v33 = vpop.f32.mrf.mxu2  ;;  %v1900_v20 = vld [vmem:[%s2476_s5 + $0x18] sm:$0xff] }
  0xb1   : > { %947 = vmatmul.bf16.gmra.mxu2 %v772_v24  ;;  %1232 = vmatpush.bf16.msrb.mxu0 %v1900_v20 }
  0xb2   : > { %1036 = vmatmul.bf16.gmra.mxu3 %v773_v25  ;;  %v547_v28 = vpop.f32.mrf.mxu0  ;;  %1921 = vmatpush.bf16.msra.mxu2 %v1900_v20 }
  0xb3   : > { %v673_v26 = vpop.f32.mrf.mxu3  ;;  %v636_v29 = vpop.f32.mrf.mxu1  ;;  %v548_v34 = vadd.f32 %v547_v28, %v2138_v48 }
  0xb4   : > { %v674_v30 = vadd.f32 %v673_v26, %v2140_v49  ;;  %v637_v35 = vadd.f32 %v636_v29, %v2140_v49 }
  0xb5   : > { %v714_v41 = vmax.f32 %v548_v34, 0.0 }
  0xb6   : > { %v745_v31 = vmax.f32 %v674_v30, 0.0  ;;  %v715_v42 = vmax.f32 %v637_v35, 0.0 }
  0xb8   : > { %v2170_v32 = vpack.c.bf16 %v745_v31, %v743_v27  ;;  %v2179_v51 = vpop.f32.mrf.mxu2 }
  0xba   : > { %v549_v37 = vpop.f32.mrf.mxu0 }
  0xbb   : > { %v676_v36 = vpop.f32.mrf.mxu3  ;;  %v638_v38 = vpop.f32.mrf.mxu1  ;;  %v550_v39 = vadd.f32 %v549_v37, %v2138_v48 }
  0xbc   : > { %v639_v40 = vadd.f32 %v638_v38, %v2140_v49  ;;  %v677_v45 = vadd.f32 %v676_v36, %v2140_v49 }
  0xbd   : > { %v716_v43 = vmax.f32 %v550_v39, 0.0 }
  0xbe   : > { %v717_v44 = vmax.f32 %v639_v40, 0.0  ;;  %v747_v54 = vmax.f32 %v677_v45, 0.0 }
  0xbf   : > { %v774_v46 = vpack.c.bf16 %v716_v43, %v714_v41 }
  0xc0   : > { %v775_v47 = vpack.c.bf16 %v717_v44, %v715_v42  ;;  %v2191_v3 = vpop.f32.mrf.mxu2 }
  0xc1   : > { %952 = vmatmul.bf16.gmra.mxu2 %v774_v46  ;;  %v1899_v46 = vld [vmem:[%s2476_s5 + $0x10] sm:$0xff] }
  0xc2   : > { %1041 = vmatmul.bf16.gmra.mxu3 %v775_v47  ;;  %v552_v55 = vpop.f32.mrf.mxu0  ;;  %1233 = vmatpush.bf16.msrb.mxu0 %v1899_v46 }
  0xc3   : > { %v678_v50 = vpop.f32.mrf.mxu3  ;;  %v641_v56 = vpop.f32.mrf.mxu1  ;;  %v553_v60 = vadd.f32 %v552_v55, %v2138_v48  ;;  %1922 = vmatpush.bf16.msra.mxu2 %v1899_v46 }
  0xc4   : > { %v679_v57 = vadd.f32 %v678_v50, %v2140_v49  ;;  %v642_v61 = vadd.f32 %v641_v56, %v2140_v49 }
  0xc5   : > { %v718_v4 = vmax.f32 %v553_v60, 0.0 }
  0xc6   : > { %v749_v58 = vmax.f32 %v679_v57, 0.0  ;;  %v719_v5 = vmax.f32 %v642_v61, 0.0 }
  0xc8   : > { %v2185_v59 = vpack.c.bf16 %v749_v58, %v747_v54  ;;  %v2195_v19 = vpop.f32.mrf.mxu2 }
  0xca   : > { %v554_v63 = vpop.f32.mrf.mxu0 }
  0xcb   : > { %v681_v62 = vpop.f32.mrf.mxu3  ;;  %v643_v0 = vpop.f32.mrf.mxu1  ;;  %v555_v1 = vadd.f32 %v554_v63, %v2138_v48 }
  0xcc   : > { %v644_v2 = vadd.f32 %v643_v0, %v2140_v49  ;;  %v682_v10 = vadd.f32 %v681_v62, %v2140_v49 }
  0xcd   : > { %v720_v6 = vmax.f32 %v555_v1, 0.0 }
  0xce   : > { %v721_v8 = vmax.f32 %v644_v2, 0.0  ;;  %v751_v14 = vmax.f32 %v682_v10, 0.0 }
  0xcf   : > { %v776_v11 = vpack.c.bf16 %v720_v6, %v718_v4 }
  0xd0   : > { %v777_v12 = vpack.c.bf16 %v721_v8, %v719_v5  ;;  %v2207_v39 = vpop.f32.mrf.mxu2 }
  0xd1   : > { %957 = vmatmul.bf16.gmra.mxu2 %v776_v11 }
  0xd2   : > { %1046 = vmatmul.bf16.gmra.mxu3 %v777_v12  ;;  %v557_v15 = vpop.f32.mrf.mxu0 }
  0xd3   : > { %v683_v13 = vpop.f32.mrf.mxu3  ;;  %v646_v16 = vpop.f32.mrf.mxu1  ;;  %v558_v23 = vadd.f32 %v557_v15, %v2138_v48 }
  0xd4   : > { %v684_v17 = vadd.f32 %v683_v13, %v2140_v49  ;;  %v647_v24 = vadd.f32 %v646_v16, %v2140_v49 }
  0xd5   : > { %v722_v30 = vmax.f32 %v558_v23, 0.0 }
  0xd6   : > { %v753_v18 = vmax.f32 %v684_v17, 0.0  ;;  %v723_v31 = vmax.f32 %v647_v24, 0.0 }
  0xd8   : > { %v2200_v22 = vpack.c.bf16 %v753_v18, %v751_v14  ;;  %v2217_v54 = vpop.f32.mrf.mxu2  ;;  %v1898_v14 = vld [vmem:[%s2476_s5 + $0x8] sm:$0xff] }
  0xd9   : > { %1234 = vmatpush.bf16.msrb.mxu0 %v1898_v14  ;;  %1923 = vmatpush.bf16.msra.mxu2 %v1898_v14 }
  0xda   : > { %v559_v26 = vpop.f32.mrf.mxu0 }
  0xdb   : > { %v686_v25 = vpop.f32.mrf.mxu3  ;;  %v648_v27 = vpop.f32.mrf.mxu1  ;;  %v560_v28 = vadd.f32 %v559_v26, %v2138_v48 }
  0xdc   : > { %v649_v29 = vadd.f32 %v648_v27, %v2140_v49  ;;  %v687_v36 = vadd.f32 %v686_v25, %v2140_v49 }
  0xdd   : > { %v724_v34 = vmax.f32 %v560_v28, 0.0 }
  0xde   : > { %v725_v35 = vmax.f32 %v649_v29, 0.0  ;;  %v755_v41 = vmax.f32 %v687_v36, 0.0 }
  0xdf   : > { %v778_v37 = vpack.c.bf16 %v724_v34, %v722_v30 }
  0xe0   : > { %v779_v38 = vpack.c.bf16 %v725_v35, %v723_v31  ;;  %v2223_v12 = vpop.f32.mrf.mxu2 }
  0xe1   : > { %962 = vmatmul.bf16.gmra.mxu2 %v778_v37 }
  0xe2   : > { %1051 = vmatmul.bf16.gmra.mxu3 %v779_v38  ;;  %v562_v42 = vpop.f32.mrf.mxu0 }
  0xe3   : > { %v688_v40 = vpop.f32.mrf.mxu3  ;;  %v651_v43 = vpop.f32.mrf.mxu1  ;;  %v563_v50 = vadd.f32 %v562_v42, %v2138_v48 }
  0xe4   : > { %v689_v44 = vadd.f32 %v688_v40, %v2140_v49  ;;  %v652_v52 = vadd.f32 %v651_v43, %v2140_v49 }
  0xe5   : > { %v726_v61 = vmax.f32 %v563_v50, 0.0 }
  0xe6   : > { %v757_v45 = vmax.f32 %v689_v44, 0.0  ;;  %v727_v62 = vmax.f32 %v652_v52, 0.0  ;;  %v1897_v52 = vld [vmem:[%s2476_s5] sm:$0xff] }
  0xe7   : > { %1235 = vmatpush.bf16.msrb.mxu0 %v1897_v52  ;;  %1924 = vmatpush.bf16.msra.mxu2 %v1897_v52  ;;  %v590_v52 = vadd.f32 %v2172_v33, %v2138_v48 }
  0xe8   : > { %v2213_v47 = vpack.c.bf16 %v757_v45, %v755_v41  ;;  %v2234_v30 = vpop.f32.mrf.mxu2 }
  0xea   : > { %v564_v56 = vpop.f32.mrf.mxu0 }
  0xeb   : > { %v691_v55 = vpop.f32.mrf.mxu3  ;;  %v653_v57 = vpop.f32.mrf.mxu1  ;;  %v565_v58 = vadd.f32 %v564_v56, %v2138_v48 }
  0xec   : > { %v654_v60 = vadd.f32 %v653_v57, %v2140_v49  ;;  %v692_v1 = vadd.f32 %v691_v55, %v2140_v49 }
  0xed   : > { %v728_v63 = vmax.f32 %v565_v58, 0.0 }
  0xee   : > { %v729_v0 = vmax.f32 %v654_v60, 0.0  ;;  %v759_v6 = vmax.f32 %v692_v1, 0.0 }
  0xef   : > { %v780_v2 = vpack.c.bf16 %v728_v63, %v726_v61 }
  0xf0   : > { %v781_v4 = vpack.c.bf16 %v729_v0, %v727_v62  ;;  %v2240_v44 = vpop.f32.mrf.mxu2 }
  0xf1   : > { %967 = vmatmul.bf16.gmra.mxu2 %v780_v2 }
  0xf2   : > { %1056 = vmatmul.bf16.gmra.mxu3 %v781_v4  ;;  %v567_v8 = vpop.f32.mrf.mxu0 }
  0xf3   : > { %v693_v5 = vpop.f32.mrf.mxu3  ;;  %v656_v10 = vpop.f32.mrf.mxu1  ;;  %v568_v16 = vadd.f32 %v567_v8, %v2138_v48 }
  0xf4   : > { %v694_v11 = vadd.f32 %v693_v5, %v2140_v49  ;;  %v657_v17 = vadd.f32 %v656_v10, %v2140_v49 }
  0xf5   : > { %v730_v26 = vmax.f32 %v568_v16, 0.0 }
  0xf6   : > { %v761_v13 = vmax.f32 %v694_v11, 0.0  ;;  %v731_v27 = vmax.f32 %v657_v17, 0.0 }
  0xf8   : > { %v2228_v15 = vpack.c.bf16 %v761_v13, %v759_v6  ;;  %v2250_v5 = vpop.f32.mrf.mxu2 }
  0xfa   : > { %v569_v20 = vpop.f32.mrf.mxu0 }
  0xfb   : > { %v696_v18 = vpop.f32.mrf.mxu3  ;;  %v658_v23 = vpop.f32.mrf.mxu1  ;;  %v570_v24 = vadd.f32 %v569_v20, %v2138_v48 }
  0xfc   : > { %v659_v25 = vadd.f32 %v658_v23, %v2140_v49  ;;  %v697_v31 = vadd.f32 %v696_v18, %v2140_v49 }
  0xfd   : > { %v732_v28 = vmax.f32 %v570_v24, 0.0 }
  0xfe   : > { %v733_v29 = vmax.f32 %v659_v25, 0.0  ;;  %v763_v37 = vmax.f32 %v697_v31, 0.0  ;;  %v1912_v31 = vld [vmem:[%s2478_s7 + $0x38] sm:$0xff] }
  0xff   : > { %v782_v34 = vpack.c.bf16 %v732_v28, %v730_v26  ;;  %v585_v28 = vadd.f32 %v2155_v7, %v2138_v48  ;;  %1433 = vmatpush.bf16.msrb.mxu1 %v1912_v31  ;;  %v600_v31 = vadd.f32 %v2207_v39, %v2138_v48 }
 0x100   : > { %v783_v35 = vpack.c.bf16 %v733_v29, %v731_v27  ;;  %v2257_v18 = vpop.f32.mrf.mxu2  ;;  %v583_v27 = vadd.f32 %v2146_v53, %v2138_v48 }
 0x101   : > { %972 = vmatmul.bf16.gmra.mxu2 %v782_v34  ;;  %v744_v34 = vmax.f32 %v585_v28, 0.0 }
 0x102   : > { %1061 = vmatmul.bf16.gmra.mxu3 %v783_v35  ;;  %v572_v38 = vpop.f32.mrf.mxu0 }
 0x103   : > { %v698_v36 = vpop.f32.mrf.mxu3  ;;  %v661_v40 = vpop.f32.mrf.mxu1  ;;  %v573_v45 = vadd.f32 %v572_v38, %v2138_v48 }
 0x104   : > { %v699_v41 = vadd.f32 %v698_v36, %v2140_v49  ;;  %v662_v46 = vadd.f32 %v661_v40, %v2140_v49 }
 0x105   : > { %v734_v60 = vmax.f32 %v573_v45, 0.0 }
 0x106   : > { %v765_v42 = vmax.f32 %v699_v41, 0.0  ;;  %v735_v61 = vmax.f32 %v662_v46, 0.0 }
 0x108   : > { %v2238_v43 = vpack.c.bf16 %v765_v42, %v763_v37 }
 0x10a   : > { %v574_v55 = vpop.f32.mrf.mxu0 }
 0x10b   : > { %v701_v50 = vpop.f32.mrf.mxu3  ;;  %v663_v56 = vpop.f32.mrf.mxu1  ;;  %v575_v57 = vadd.f32 %v574_v55, %v2138_v48 }
 0x10c   : > { %v664_v58 = vadd.f32 %v663_v56, %v2140_v49  ;;  %v702_v0 = vadd.f32 %v701_v50, %v2140_v49  ;;  %v588_v50 = vadd.f32 %v2163_v21, %v2138_v48  ;;  %v1911_v56 = vld [vmem:[%s2478_s7 + $0x30] sm:$0xff] }
 0x10d   : > { %v736_v62 = vmax.f32 %v575_v57, 0.0  ;;  %1434 = vmatpush.bf16.msrb.mxu1 %v1911_v56 }
 0x10e   : > { %v737_v63 = vmax.f32 %v664_v58, 0.0  ;;  %v767_v6 = vmax.f32 %v702_v0, 0.0  ;;  %v746_v57 = vmax.f32 %v588_v50, 0.0  ;;  %v748_v58 = vmax.f32 %v590_v52, 0.0 }
 0x10f   : > { %v784_v1 = vpack.c.bf16 %v736_v62, %v734_v60  ;;  %v605_v50 = vadd.f32 %v2223_v12, %v2138_v48 }
 0x110   : > { %v785_v2 = vpack.c.bf16 %v737_v63, %v735_v61  ;;  %v790_v0 = vpack.c.bf16 %v748_v58, %v746_v57 }
 0x111   : > { %977 = vmatmul.bf16.gmra.mxu2 %v784_v1  ;;  %v760_v57 = vmax.f32 %v605_v50, 0.0 }
 0x112   : > { %1066 = vmatmul.bf16.gmra.mxu3 %v785_v2  ;;  %v577_v8 = vpop.f32.mrf.mxu0 }
 0x113   : > { %v703_v4 = vpop.f32.mrf.mxu3  ;;  %v578_v14 = vadd.f32 %v577_v8, %v2138_v48  ;;  %v595_v8 = vadd.f32 %v2191_v3, %v2138_v48 }
 0x114   : > { %v704_v10 = vadd.f32 %v703_v4, %v2140_v49  ;;  %v2263_v49 = vld [vmem:[%s2475_s4] ss:$0 sm:$0xff] }
 0x115   : > { %v738_v20 = vmax.f32 %v578_v14, 0.0 }
 0x116   : > { %v769_v11 = vmax.f32 %v704_v10, 0.0 }
 0x118   : > { %v2253_v13 = vpack.c.bf16 %v769_v11, %v767_v6  ;;  %v593_v6 = vadd.f32 %v2179_v51, %v2138_v48  ;;  %v1910_v11 = vld [vmem:[%s2478_s7 + $0x28] sm:$0xff] }
 0x119   : > { %1435 = vmatpush.bf16.msrb.mxu1 %v1910_v11 }
 0x11a   : > { %v579_v16 = vpop.f32.mrf.mxu0  ;;  %v750_v14 = vmax.f32 %v593_v6, 0.0 }
 0x11b   : > { %v580_v17 = vadd.f32 %v579_v16, %v2138_v48  ;;  %v752_v16 = vmax.f32 %v595_v8, 0.0 }
 0x11d   : > { %v740_v23 = vmax.f32 %v580_v17, 0.0 }
 0x11f   : > { %v786_v24 = vpack.c.bf16 %v740_v23, %v738_v20 }
 0x121   : > { %982 = vmatmul.bf16.gmra.mxu2 %v786_v24 }
 0x122   : > { %1071 = vmatmul.bf16.gmra.mxu3 %v2157_v9  ;;  %v742_v9 = vmax.f32 %v583_v27, 0.0 }
 0x124   : > { %v943_v25 = vpop.f32.mrf.mxu2  ;;  %v788_v41 = vpack.c.bf16 %v744_v34, %v742_v9  ;;  %v1909_v34 = vld [vmem:[%s2478_s7 + $0x20] sm:$0xff] }
 0x125   : > { %v1032_v26 = vpop.f32.mrf.mxu3  ;;  %v944_v29 = vadd.f32 %v2263_v49, %v943_v25  ;;  %v792_v25 = vpack.c.bf16 %v752_v16, %v750_v14  ;;  %1436 = vmatpush.bf16.msrb.mxu1 %v1909_v34 }
 0x127   : > { %v1033_v37 = vadd.f32 %v1032_v26, %v944_v29  ;;  %v598_v29 = vadd.f32 %v2195_v19, %v2138_v48 }
 0x129   : > { %v1112_v53 = vmax.f32 %v1033_v37, 0.0 }
 0x12c   : > { %v945_v35 = vpop.f32.mrf.mxu2 }
 0x12d   : > { %v1034_v36 = vpop.f32.mrf.mxu3  ;;  %v946_v38 = vadd.f32 %v2263_v49, %v945_v35  ;;  %v754_v35 = vmax.f32 %v598_v29, 0.0 }
 0x12f   : > { %v1035_v40 = vadd.f32 %v1034_v36, %v946_v38  ;;  %v756_v36 = vmax.f32 %v600_v31, 0.0 }
 0x131   : > { %v1113_v42 = vmax.f32 %v1035_v40, 0.0  ;;  %987 = vmatmul.bf16.gmra.mxu2 %v788_v41 }
 0x132   : > { %1076 = vmatmul.bf16.gmra.mxu3 %v2170_v32 }
 0x133   : > { %v1144_v7 = vpack.c.bf16 %v1113_v42, %v1112_v53  ;;  %v794_v53 = vpack.c.bf16 %v756_v36, %v754_v35 }
 0x134   : > { %v948_v45 = vpop.f32.mrf.mxu2 }
 0x135   : > { %v1037_v46 = vpop.f32.mrf.mxu3  ;;  %1236 = vmatmul.bf16.vlgmr.msrb.gmra.mxu0 %v1144_v7  ;;  %v949_v55 = vadd.f32 %v2263_v49, %v948_v45 }
 0x137   : > { %v1038_v61 = vadd.f32 %v1037_v46, %v949_v55  ;;  %v603_v46 = vadd.f32 %v2217_v54, %v2138_v48  ;;  %v1908_v55 = vld [vmem:[%s2478_s7 + $0x18] sm:$0xff] }
 0x138   : > { %1437 = vmatpush.bf16.msrb.mxu1 %v1908_v55 }
 0x139   : > { %v1114_v21 = vmax.f32 %v1038_v61, 0.0  ;;  %v758_v56 = vmax.f32 %v603_v46, 0.0 }
 0x13c   : > { %v950_v32 = vpop.f32.mrf.mxu2 }
 0x13d   : > { %v1039_v60 = vpop.f32.mrf.mxu3  ;;  %v951_v62 = vadd.f32 %v2263_v49, %v950_v32 }
 0x13f   : > { %v1040_v63 = vadd.f32 %v1039_v60, %v951_v62  ;;  %v796_v62 = vpack.c.bf16 %v760_v57, %v758_v56 }
 0x141   : > { %v1115_v1 = vmax.f32 %v1040_v63, 0.0  ;;  %992 = vmatmul.bf16.gmra.mxu2 %v790_v0 }
 0x142   : > { %1081 = vmatmul.bf16.gmra.mxu3 %v2185_v59 }
 0x143   : > { %v1145_v33 = vpack.c.bf16 %v1115_v1, %v1114_v21  ;;  %v608_v1 = vadd.f32 %v2234_v30, %v2138_v48 }
 0x144   : > { %v953_v2 = vpop.f32.mrf.mxu2 }
 0x145   : > { %v1042_v4 = vpop.f32.mrf.mxu3  ;;  %1241 = vmatmul.bf16.gmra.mxu0 %v1145_v33  ;;  %v954_v10 = vadd.f32 %v2263_v49, %v953_v2  ;;  %v610_v33 = vadd.f32 %v2240_v44, %v2138_v48  ;;  %v762_v6 = vmax.f32 %v608_v1, 0.0 }
 0x147   : > { %v1043_v20 = vadd.f32 %v1042_v4, %v954_v10  ;;  %v1907_v4 = vld [vmem:[%s2478_s7 + $0x10] sm:$0xff]  ;;  %v764_v8 = vmax.f32 %v610_v33, 0.0 }
 0x148   : > { %1438 = vmatpush.bf16.msrb.mxu1 %v1907_v4 }
 0x149   : > { %v1116_v51 = vmax.f32 %v1043_v20, 0.0 }
 0x14c   : > { %v955_v59 = vpop.f32.mrf.mxu2 }
 0x14d   : > { %v1044_v17 = vpop.f32.mrf.mxu3  ;;  %v956_v23 = vadd.f32 %v2263_v49, %v955_v59  ;;  %v798_v59 = vpack.c.bf16 %v764_v8, %v762_v6 }
 0x14f   : > { %v1045_v24 = vadd.f32 %v1044_v17, %v956_v23 }
 0x151   : > { %v1117_v26 = vmax.f32 %v1045_v24, 0.0  ;;  %997 = vmatmul.bf16.gmra.mxu2 %v792_v25  ;;  %v613_v24 = vadd.f32 %v2250_v5, %v2138_v48  ;;  %v615_v25 = vadd.f32 %v2257_v18, %v2138_v48 }
 0x152   : > { %1086 = vmatmul.bf16.gmra.mxu3 %v2200_v22 }
 0x153   : > { %v1146_v3 = vpack.c.bf16 %v1117_v26, %v1116_v51  ;;  %v1906_v26 = vld [vmem:[%s2478_s7 + $0x8] sm:$0xff] }
 0x154   : > { %v958_v27 = vpop.f32.mrf.mxu2  ;;  %1439 = vmatpush.bf16.msrb.mxu1 %v1906_v26 }
 0x155   : > { %v1047_v28 = vpop.f32.mrf.mxu3  ;;  %1246 = vmatmul.bf16.gmra.mxu0 %v1146_v3  ;;  %v959_v9 = vadd.f32 %v2263_v49, %v958_v27  ;;  %v766_v3 = vmax.f32 %v613_v24, 0.0  ;;  %v768_v27 = vmax.f32 %v615_v25, 0.0 }
 0x157   : > { %v1048_v38 = vadd.f32 %v1047_v28, %v959_v9  ;;  %v800_v34 = vpack.c.bf16 %v768_v27, %v766_v3 }
 0x159   : > { %v1118_v19 = vmax.f32 %v1048_v38, 0.0 }
 0x15c   : > { %v960_v22 = vpop.f32.mrf.mxu2 }
 0x15d   : > { %v1049_v37 = vpop.f32.mrf.mxu3  ;;  %v961_v40 = vadd.f32 %v2263_v49, %v960_v22 }
 0x15f   : > { %v1050_v41 = vadd.f32 %v1049_v37, %v961_v40  ;;  %v1905_v37 = vld [vmem:[%s2478_s7] sm:$0xff] }
 0x160   : > { %1440 = vmatpush.bf16.msrb.mxu1 %v1905_v37 }
 0x161   : > { %v1119_v42 = vmax.f32 %v1050_v41, 0.0  ;;  %1002 = vmatmul.bf16.gmra.mxu2 %v794_v53 }
 0x162   : > { %1091 = vmatmul.bf16.gmra.mxu3 %v2213_v47 }
 0x163   : > { %v1147_v39 = vpack.c.bf16 %v1119_v42, %v1118_v19 }
 0x164   : > { %v963_v7 = vpop.f32.mrf.mxu2 }
 0x165   : > { %v1052_v45 = vpop.f32.mrf.mxu3  ;;  %1251 = vmatmul.bf16.gmra.mxu0 %v1147_v39  ;;  %v964_v52 = vadd.f32 %v2263_v49, %v963_v7 }
 0x167   : > { %v1053_v32 = vadd.f32 %v1052_v45, %v964_v52 }
 0x169   : > { %v1120_v54 = vmax.f32 %v1053_v32, 0.0 }
 0x16c   : > { %v965_v47 = vpop.f32.mrf.mxu2 }
 0x16d   : > { %v1054_v58 = vpop.f32.mrf.mxu3  ;;  %v966_v60 = vadd.f32 %v2263_v49, %v965_v47 }
 0x16f   : > { %v1055_v61 = vadd.f32 %v1054_v58, %v966_v60 }
 0x171   : > { %v1121_v63 = vmax.f32 %v1055_v61, 0.0  ;;  %1007 = vmatmul.bf16.gmra.mxu2 %v796_v62 }
 0x172   : > { %1096 = vmatmul.bf16.gmra.mxu3 %v2228_v15 }
 0x173   : > { %v1148_v12 = vpack.c.bf16 %v1121_v63, %v1120_v54  ;;  %v2345_v54 = vld [vmem:[%s2477_s6] ss:$0 sm:$0xff] }
 0x174   : > { %v968_v0 = vpop.f32.mrf.mxu2 }
 0x175   : > { %v1057_v21 = vpop.f32.mrf.mxu3  ;;  %1256 = vmatmul.bf16.gmra.mxu0 %v1148_v12  ;;  %v969_v2 = vadd.f32 %v2263_v49, %v968_v0 }
 0x177   : > { %v1058_v11 = vadd.f32 %v1057_v21, %v969_v2 }
 0x179   : > { %v1122_v30 = vmax.f32 %v1058_v11, 0.0 }
 0x17c   : > { %v970_v15 = vpop.f32.mrf.mxu2 }
 0x17d   : > { %v1059_v10 = vpop.f32.mrf.mxu3  ;;  %v971_v14 = vadd.f32 %v2263_v49, %v970_v15 }
 0x17f   : > { %v1060_v16 = vadd.f32 %v1059_v10, %v971_v14 }
 0x181   : > { %v1123_v17 = vmax.f32 %v1060_v16, 0.0  ;;  %1012 = vmatmul.bf16.gmra.mxu2 %v798_v59 }
 0x182   : > { %1101 = vmatmul.bf16.gmra.mxu3 %v2238_v43 }
 0x183   : > { %v1149_v44 = vpack.c.bf16 %v1123_v17, %v1122_v30 }
 0x184   : > { %v973_v20 = vpop.f32.mrf.mxu2 }
 0x185   : > { %v1062_v23 = vpop.f32.mrf.mxu3  ;;  %1261 = vmatmul.bf16.gmra.mxu0 %v1149_v44  ;;  %v974_v51 = vadd.f32 %v2263_v49, %v973_v20 }
 0x187   : > { %v1063_v29 = vadd.f32 %v1062_v23, %v974_v51 }
 0x189   : > { %v1124_v5 = vmax.f32 %v1063_v29, 0.0 }
 0x18c   : > { %v975_v43 = vpop.f32.mrf.mxu2 }
 0x18d   : > { %v1064_v28 = vpop.f32.mrf.mxu3  ;;  %v976_v31 = vadd.f32 %v2263_v49, %v975_v43 }
 0x18f   : > { %v1065_v9 = vadd.f32 %v1064_v28, %v976_v31 }
 0x191   : > { %v1125_v35 = vmax.f32 %v1065_v9, 0.0  ;;  %1017 = vmatmul.bf16.gmra.mxu2 %v800_v34 }
 0x192   : > { %1106 = vmatmul.bf16.gmra.mxu3 %v2253_v13 }
 0x193   : > { %v1150_v48 = vpack.c.bf16 %v1125_v35, %v1124_v5 }
 0x194   : > { %v978_v18 = vpop.f32.mrf.mxu2 }
 0x195   : > { %v1067_v36 = vpop.f32.mrf.mxu3  ;;  %1266 = vmatmul.bf16.gmra.mxu0 %v1150_v48  ;;  %v979_v22 = vadd.f32 %v2263_v49, %v978_v18 }
 0x197   : > { %v1068_v41 = vadd.f32 %v1067_v36, %v979_v22 }
 0x199   : > { %v1126_v42 = vmax.f32 %v1068_v41, 0.0 }
 0x19c   : > { %v980_v38 = vpop.f32.mrf.mxu2 }
 0x19d   : > { %v1069_v40 = vpop.f32.mrf.mxu3  ;;  %v981_v53 = vadd.f32 %v2263_v49, %v980_v38 }
 0x19f   : > { %v1070_v19 = vadd.f32 %v1069_v40, %v981_v53 }
 0x1a1   : > { %v1127_v39 = vmax.f32 %v1070_v19, 0.0 }
 0x1a3   : > { %v1151_v13 = vpack.c.bf16 %v1127_v39, %v1126_v42 }
 0x1a4   : > { %v983_v7 = vpop.f32.mrf.mxu2 }
 0x1a5   : > { %v1072_v45 = vpop.f32.mrf.mxu3  ;;  %1271 = vmatmul.bf16.gmra.mxu0 %v1151_v13  ;;  %v984_v46 = vadd.f32 %v2263_v49, %v983_v7 }
 0x1a7   : > { %v1073_v55 = vadd.f32 %v1072_v45, %v984_v46 }
 0x1a9   : > { %v1128_v47 = vmax.f32 %v1073_v55, 0.0 }
 0x1ac   : > { %v985_v50 = vpop.f32.mrf.mxu2 }
 0x1ad   : > { %v1074_v52 = vpop.f32.mrf.mxu3  ;;  %v986_v56 = vadd.f32 %v2263_v49, %v985_v50 }
 0x1af   : > { %v1075_v57 = vadd.f32 %v1074_v52, %v986_v56 }
 0x1b1   : > { %v1129_v58 = vmax.f32 %v1075_v57, 0.0 }
 0x1b2   : > { %v1237_v32 = vpop.f32.mrf.mxu0 }
 0x1b3   : > { %v1152_v60 = vpack.c.bf16 %v1129_v58, %v1128_v47  ;;  %v1238_v63 = vadd.f32 %v2345_v54, %v1237_v32 }
 0x1b4   : > { %v988_v61 = vpop.f32.mrf.mxu2 }
 0x1b5   : > { %v1077_v62 = vpop.f32.mrf.mxu3  ;;  %1276 = vmatmul.bf16.gmra.mxu0 %v1152_v60  ;;  %v989_v12 = vadd.f32 %v2263_v49, %v988_v61  ;;  %v1317_v2 = vmax.f32 %v1238_v63, 0.0 }
 0x1b7   : > { %v1078_v4 = vadd.f32 %v1077_v62, %v989_v12 }
 0x1b9   : > { %v1130_v11 = vmax.f32 %v1078_v4, 0.0 }
 0x1ba   : > { %v1239_v0 = vpop.f32.mrf.mxu0 }
 0x1bb   : > { %v1240_v21 = vadd.f32 %v2345_v54, %v1239_v0 }
 0x1bc   : > { %v990_v1 = vpop.f32.mrf.mxu2 }
 0x1bd   : > { %v1079_v33 = vpop.f32.mrf.mxu3  ;;  %v1318_v6 = vmax.f32 %v1240_v21, 0.0  ;;  %v991_v8 = vadd.f32 %v2263_v49, %v990_v1 }
 0x1bf   : > { %v1080_v15 = vadd.f32 %v1079_v33, %v991_v8  ;;  %v1349_v10 = vpack.c.bf16 %v1318_v6, %v1317_v2 }
 0x1c1   : > { %v1131_v14 = vmax.f32 %v1080_v15, 0.0  ;;  %1441 = vmatmul.bf16.vlgmr.msrb.gmra.mxu1 %v1349_v10 }
 0x1c2   : > { %v1242_v16 = vpop.f32.mrf.mxu0 }
 0x1c3   : > { %v1153_v59 = vpack.c.bf16 %v1131_v14, %v1130_v11  ;;  %v1243_v44 = vadd.f32 %v2345_v54, %v1242_v16 }
 0x1c4   : > { %v993_v30 = vpop.f32.mrf.mxu2 }
 0x1c5   : > { %v1082_v17 = vpop.f32.mrf.mxu3  ;;  %1281 = vmatmul.bf16.gmra.mxu0 %v1153_v59  ;;  %v994_v20 = vadd.f32 %v2263_v49, %v993_v30  ;;  %v1319_v26 = vmax.f32 %v1243_v44, 0.0 }
 0x1c7   : > { %v1083_v3 = vadd.f32 %v1082_v17, %v994_v20 }
 0x1c9   : > { %v1132_v31 = vmax.f32 %v1083_v3, 0.0 }
 0x1ca   : > { %v1244_v23 = vpop.f32.mrf.mxu0 }
 0x1cb   : > { %v1245_v24 = vadd.f32 %v2345_v54, %v1244_v23 }
 0x1cc   : > { %v995_v25 = vpop.f32.mrf.mxu2 }
 0x1cd   : > { %v1084_v51 = vpop.f32.mrf.mxu3  ;;  %v1320_v27 = vmax.f32 %v1245_v24, 0.0  ;;  %v996_v43 = vadd.f32 %v2263_v49, %v995_v25 }
 0x1cf   : > { %v1085_v28 = vadd.f32 %v1084_v51, %v996_v43  ;;  %v1350_v29 = vpack.c.bf16 %v1320_v27, %v1319_v26 }
 0x1d1   : > { %v1133_v9 = vmax.f32 %v1085_v28, 0.0  ;;  %1446 = vmatmul.bf16.gmra.mxu1 %v1350_v29 }
 0x1d2   : > { %v1247_v34 = vpop.f32.mrf.mxu0 }
 0x1d3   : > { %v1154_v5 = vpack.c.bf16 %v1133_v9, %v1132_v31  ;;  %v1248_v18 = vadd.f32 %v2345_v54, %v1247_v34 }
 0x1d4   : > { %v998_v35 = vpop.f32.mrf.mxu2 }
 0x1d5   : > { %v1087_v48 = vpop.f32.mrf.mxu3  ;;  %1286 = vmatmul.bf16.gmra.mxu0 %v1154_v5  ;;  %v999_v36 = vadd.f32 %v2263_v49, %v998_v35  ;;  %v1321_v41 = vmax.f32 %v1248_v18, 0.0 }
 0x1d7   : > { %v1088_v53 = vadd.f32 %v1087_v48, %v999_v36 }
 0x1d9   : > { %v1134_v7 = vmax.f32 %v1088_v53, 0.0 }
 0x1da   : > { %v1249_v22 = vpop.f32.mrf.mxu0 }
 0x1db   : > { %v1250_v37 = vadd.f32 %v2345_v54, %v1249_v22 }
 0x1dc   : > { %v1000_v38 = vpop.f32.mrf.mxu2 }
 0x1dd   : > { %v1089_v40 = vpop.f32.mrf.mxu3  ;;  %v1322_v19 = vmax.f32 %v1250_v37, 0.0  ;;  %v1001_v42 = vadd.f32 %v2263_v49, %v1000_v38 }
 0x1df   : > { %v1090_v39 = vadd.f32 %v1089_v40, %v1001_v42  ;;  %v1351_v13 = vpack.c.bf16 %v1322_v19, %v1321_v41 }
 0x1e1   : > { %v1135_v45 = vmax.f32 %v1090_v39, 0.0  ;;  %1451 = vmatmul.bf16.gmra.mxu1 %v1351_v13 }
 0x1e2   : > { %v1252_v46 = vpop.f32.mrf.mxu0 }
 0x1e3   : > { %v1155_v50 = vpack.c.bf16 %v1135_v45, %v1134_v7  ;;  %v1253_v56 = vadd.f32 %v2345_v54, %v1252_v46 }
 0x1e4   : > { %v1003_v52 = vpop.f32.mrf.mxu2 }
 0x1e5   : > { %v1092_v55 = vpop.f32.mrf.mxu3  ;;  %1291 = vmatmul.bf16.gmra.mxu0 %v1155_v50  ;;  %v1004_v57 = vadd.f32 %v2263_v49, %v1003_v52  ;;  %v1323_v61 = vmax.f32 %v1253_v56, 0.0 }
 0x1e7   : > { %v1093_v62 = vadd.f32 %v1092_v55, %v1004_v57 }
 0x1e9   : > { %v1136_v1 = vmax.f32 %v1093_v62, 0.0 }
 0x1ea   : > { %v1254_v47 = vpop.f32.mrf.mxu0 }
 0x1eb   : > { %v1255_v58 = vadd.f32 %v2345_v54, %v1254_v47 }
 0x1ec   : > { %v1005_v32 = vpop.f32.mrf.mxu2 }
 0x1ed   : > { %v1094_v60 = vpop.f32.mrf.mxu3  ;;  %v1324_v63 = vmax.f32 %v1255_v58, 0.0  ;;  %v1006_v12 = vadd.f32 %v2263_v49, %v1005_v32 }
 0x1ef   : > { %v1095_v0 = vadd.f32 %v1094_v60, %v1006_v12  ;;  %v1352_v21 = vpack.c.bf16 %v1324_v63, %v1323_v61 }
 0x1f1   : > { %v1137_v33 = vmax.f32 %v1095_v0, 0.0  ;;  %1456 = vmatmul.bf16.gmra.mxu1 %v1352_v21 }
 0x1f2   : > { %v1257_v2 = vpop.f32.mrf.mxu0 }
 0x1f3   : > { %v1156_v4 = vpack.c.bf16 %v1137_v33, %v1136_v1  ;;  %v1258_v15 = vadd.f32 %v2345_v54, %v1257_v2 }
 0x1f4   : > { %v1008_v6 = vpop.f32.mrf.mxu2 }
 0x1f5   : > { %v1097_v8 = vpop.f32.mrf.mxu3  ;;  %1296 = vmatmul.bf16.gmra.mxu0 %v1156_v4  ;;  %v1009_v10 = vadd.f32 %v2263_v49, %v1008_v6  ;;  %v1325_v30 = vmax.f32 %v1258_v15, 0.0 }
 0x1f7   : > { %v1098_v17 = vadd.f32 %v1097_v8, %v1009_v10  ;;  %v2383_v8 = vld [vmem:[%s2479_s8] ss:$0 sm:$0xff] }
 0x1f9   : > { %v1138_v25 = vmax.f32 %v1098_v17, 0.0 }
 0x1fa   : > { %v1259_v11 = vpop.f32.mrf.mxu0 }
 0x1fb   : > { %v1260_v14 = vadd.f32 %v2345_v54, %v1259_v11 }
 0x1fc   : > { %v1010_v16 = vpop.f32.mrf.mxu2 }
 0x1fd   : > { %v1099_v59 = vpop.f32.mrf.mxu3  ;;  %v1326_v44 = vmax.f32 %v1260_v14, 0.0  ;;  %v1011_v20 = vadd.f32 %v2263_v49, %v1010_v16 }
 0x1ff   : > { %v1353_v23 = vpack.c.bf16 %v1326_v44, %v1325_v30  ;;  %v1100_v24 = vadd.f32 %v1099_v59, %v1011_v20 }
 0x201   : > { %v1139_v51 = vmax.f32 %v1100_v24, 0.0  ;;  %1461 = vmatmul.bf16.gmra.mxu1 %v1353_v23 }
 0x202   : > { %v1262_v26 = vpop.f32.mrf.mxu0 }
 0x203   : > { %v1157_v3 = vpack.c.bf16 %v1139_v51, %v1138_v25  ;;  %v1263_v28 = vadd.f32 %v2345_v54, %v1262_v26 }
 0x204   : > { %v1013_v27 = vpop.f32.mrf.mxu2 }
 0x205   : > { %v1102_v43 = vpop.f32.mrf.mxu3  ;;  %1301 = vmatmul.bf16.gmra.mxu0 %v1157_v3  ;;  %v1014_v29 = vadd.f32 %v2263_v49, %v1013_v27  ;;  %v1327_v35 = vmax.f32 %v1263_v28, 0.0 }
 0x207   : > { %v1103_v48 = vadd.f32 %v1102_v43, %v1014_v29 }
 0x209   : > { %v1140_v38 = vmax.f32 %v1103_v48, 0.0 }
 0x20a   : > { %v1264_v31 = vpop.f32.mrf.mxu0 }
 0x20b   : > { %v1265_v9 = vadd.f32 %v2345_v54, %v1264_v31 }
 0x20c   : > { %v1015_v34 = vpop.f32.mrf.mxu2 }
 0x20d   : > { %v1104_v5 = vpop.f32.mrf.mxu3  ;;  %v1328_v18 = vmax.f32 %v1265_v9, 0.0  ;;  %v1016_v36 = vadd.f32 %v2263_v49, %v1015_v34 }
 0x20f   : > { %v1354_v22 = vpack.c.bf16 %v1328_v18, %v1327_v35  ;;  %v1105_v37 = vadd.f32 %v1104_v5, %v1016_v36 }
 0x211   : > { %v1141_v40 = vmax.f32 %v1105_v37, 0.0  ;;  %1466 = vmatmul.bf16.gmra.mxu1 %v1354_v22 }
 0x212   : > { %v1267_v41 = vpop.f32.mrf.mxu0 }
 0x213   : > { %v1158_v53 = vpack.c.bf16 %v1141_v40, %v1140_v38  ;;  %v1268_v39 = vadd.f32 %v2345_v54, %v1267_v41 }
 0x214   : > { %v1018_v19 = vpop.f32.mrf.mxu2 }
 0x215   : > { %v1107_v42 = vpop.f32.mrf.mxu3  ;;  %1306 = vmatmul.bf16.gmra.mxu0 %v1158_v53  ;;  %v1019_v13 = vadd.f32 %v2263_v49, %v1018_v19  ;;  %v1329_v50 = vmax.f32 %v1268_v39, 0.0 }
 0x217   : > { %v1108_v52 = vadd.f32 %v1107_v42, %v1019_v13 }
 0x219   : > { %v1142_v32 = vmax.f32 %v1108_v52, 0.0 }
 0x21a   : > { %v1269_v7 = vpop.f32.mrf.mxu0 }
 0x21b   : > { %v1270_v45 = vadd.f32 %v2345_v54, %v1269_v7 }
 0x21c   : > { %v1020_v46 = vpop.f32.mrf.mxu2 }
 0x21d   : > { %v1330_v55 = vmax.f32 %v1270_v45, 0.0  ;;  %v1021_v56 = vadd.f32 %v2263_v49, %v1020_v46  ;;  %v1109_v57 = vpop.f32.mrf.mxu3 }
 0x21f   : > { %v1355_v47 = vpack.c.bf16 %v1330_v55, %v1329_v50  ;;  %v1110_v58 = vadd.f32 %v1109_v57, %v1021_v56 }
 0x221   : > { %v1143_v60 = vmax.f32 %v1110_v58, 0.0  ;;  %1471 = vmatmul.bf16.gmra.mxu1 %v1355_v47 }
 0x222   : > { %v1272_v61 = vpop.f32.mrf.mxu0 }
 0x223   : > { %v1159_v62 = vpack.c.bf16 %v1143_v60, %v1142_v32  ;;  %v1273_v63 = vadd.f32 %v2345_v54, %v1272_v61 }
 0x225   : > { %1311 = vmatmul.bf16.vlgmr.msra.gmra.mxu2 %v1159_v62  ;;  %v1331_v21 = vmax.f32 %v1273_v63, 0.0 }
 0x22a   : > { %v1274_v12 = vpop.f32.mrf.mxu0 }
 0x22b   : > { %v1275_v0 = vadd.f32 %v2345_v54, %v1274_v12 }
 0x22d   : > { %v1332_v1 = vmax.f32 %v1275_v0, 0.0 }
 0x22f   : > { %v1356_v33 = vpack.c.bf16 %v1332_v1, %v1331_v21 }
 0x231   : > { %1476 = vmatmul.bf16.gmra.mxu1 %v1356_v33 }
 0x232   : > { %v1277_v49 = vpop.f32.mrf.mxu0 }
 0x233   : > { %v1278_v2 = vadd.f32 %v2345_v54, %v1277_v49 }
 0x235   : > { %v1333_v15 = vmax.f32 %v1278_v2, 0.0 }
 0x23a   : > { %v1279_v4 = vpop.f32.mrf.mxu0 }
 0x23b   : > { %v1280_v6 = vadd.f32 %v2345_v54, %v1279_v4 }
 0x23d   : > { %v1334_v10 = vmax.f32 %v1280_v6, 0.0 }
 0x23e   : > { %v1442_v11 = vpop.f32.mrf.mxu1 }
 0x23f   : > { %v1357_v14 = vpack.c.bf16 %v1334_v10, %v1333_v15  ;;  %v1443_v16 = vadd.f32 %v2383_v8, %v1442_v11 }
 0x241   : > { %1522 = vst [vmem:[%s2388_s12] sm:$0xff] %v1443_v16  ;;  %1481 = vmatmul.bf16.gmra.mxu1 %v1357_v14 }
 0x242   : > { %v1282_v59 = vpop.f32.mrf.mxu0 }
 0x243   : > { %v1283_v44 = vadd.f32 %v2345_v54, %v1282_v59 }
 0x245   : > { %v1335_v24 = vmax.f32 %v1283_v44, 0.0 }
 0x246   : > { %v1444_v30 = vpop.f32.mrf.mxu1 }
 0x247   : > { %v1445_v17 = vadd.f32 %v2383_v8, %v1444_v30 }
 0x249   : > { %1523 = vst [vmem:[%s2388_s12 + $0x8] sm:$0xff] %v1445_v17 }
 0x24a   : > { %v1284_v20 = vpop.f32.mrf.mxu0 }
 0x24b   : > { %v1285_v23 = vadd.f32 %v2345_v54, %v1284_v20 }
 0x24d   : > { %v1336_v25 = vmax.f32 %v1285_v23, 0.0 }
 0x24e   : > { %v1447_v51 = vpop.f32.mrf.mxu1 }
 0x24f   : > { %v1358_v26 = vpack.c.bf16 %v1336_v25, %v1335_v24  ;;  %v1448_v3 = vadd.f32 %v2383_v8, %v1447_v51 }
 0x251   : > { %1524 = vst [vmem:[%s2388_s12 + $0x10] sm:$0xff] %v1448_v3  ;;  %1486 = vmatmul.bf16.gmra.mxu1 %v1358_v26 }
 0x252   : > { %v1287_v27 = vpop.f32.mrf.mxu0 }
 0x253   : > { %v1288_v29 = vadd.f32 %v2345_v54, %v1287_v27 }
 0x255   : > { %v1337_v34 = vmax.f32 %v1288_v29, 0.0 }
 0x256   : > { %v1449_v43 = vpop.f32.mrf.mxu1 }
 0x257   : > { %v1450_v28 = vadd.f32 %v2383_v8, %v1449_v43 }
 0x259   : > { %1525 = vst [vmem:[%s2388_s12 + $0x18] sm:$0xff] %v1450_v28 }
 0x25a   : > { %v1289_v31 = vpop.f32.mrf.mxu0 }
 0x25b   : > { %v1290_v9 = vadd.f32 %v2345_v54, %v1289_v31 }
 0x25d   : > { %v1338_v5 = vmax.f32 %v1290_v9, 0.0 }
 0x25e   : > { %v1452_v35 = vpop.f32.mrf.mxu1 }
 0x25f   : > { %v1359_v48 = vpack.c.bf16 %v1338_v5, %v1337_v34  ;;  %v1453_v18 = vadd.f32 %v2383_v8, %v1452_v35 }
 0x261   : > { %1526 = vst [vmem:[%s2388_s12 + $0x20] sm:$0xff] %v1453_v18  ;;  %1491 = vmatmul.bf16.gmra.mxu1 %v1359_v48 }
 0x262   : > { %v1292_v36 = vpop.f32.mrf.mxu0 }
 0x263   : > { %v1293_v38 = vadd.f32 %v2345_v54, %v1292_v36 }
 0x265   : > { %v1339_v53 = vmax.f32 %v1293_v38, 0.0 }
 0x266   : > { %v1454_v22 = vpop.f32.mrf.mxu1 }
 0x267   : > { %v1455_v37 = vadd.f32 %v2383_v8, %v1454_v22 }
 0x269   : > { %1527 = vst [vmem:[%s2388_s12 + $0x28] sm:$0xff] %v1455_v37 }
 0x26a   : > { %v1294_v40 = vpop.f32.mrf.mxu0 }
 0x26b   : > { %v1295_v41 = vadd.f32 %v2345_v54, %v1294_v40 }
 0x26d   : > { %v1340_v19 = vmax.f32 %v1295_v41, 0.0 }
 0x26e   : > { %v1457_v42 = vpop.f32.mrf.mxu1 }
 0x26f   : > { %v1360_v39 = vpack.c.bf16 %v1340_v19, %v1339_v53  ;;  %v1458_v13 = vadd.f32 %v2383_v8, %v1457_v42 }
 0x271   : > { %1528 = vst [vmem:[%s2388_s12 + $0x30] sm:$0xff] %v1458_v13  ;;  %1496 = vmatmul.bf16.gmra.mxu1 %v1360_v39 }
 0x272   : > { %v1297_v7 = vpop.f32.mrf.mxu0 }
 0x273   : > { %v1298_v50 = vadd.f32 %v2345_v54, %v1297_v7 }
 0x275   : > { %v1341_v56 = vmax.f32 %v1298_v50, 0.0 }
 0x276   : > { %v1459_v45 = vpop.f32.mrf.mxu1 }
 0x277   : > { %v1460_v46 = vadd.f32 %v2383_v8, %v1459_v45 }
 0x279   : > { %1529 = vst [vmem:[%s2388_s12 + $0x38] sm:$0xff] %v1460_v46 }
 0x27a   : > { %v1299_v52 = vpop.f32.mrf.mxu0 }
 0x27b   : > { %v1300_v55 = vadd.f32 %v2345_v54, %v1299_v52 }
 0x27d   : > { %v1342_v57 = vmax.f32 %v1300_v55, 0.0 }
 0x27e   : > { %v1462_v47 = vpop.f32.mrf.mxu1 }
 0x27f   : > { %v1361_v58 = vpack.c.bf16 %v1342_v57, %v1341_v56  ;;  %v1463_v32 = vadd.f32 %v2383_v8, %v1462_v47 }
 0x281   : > { %1530 = vst [vmem:[%s2388_s12 + $0x40] sm:$0xff] %v1463_v32  ;;  %1501 = vmatmul.bf16.gmra.mxu1 %v1361_v58 }
 0x282   : > { %v1302_v60 = vpop.f32.mrf.mxu0 }
 0x283   : > { %v1303_v63 = vadd.f32 %v2345_v54, %v1302_v60 }
 0x285   : > { %v1343_v21 = vmax.f32 %v1303_v63, 0.0 }
 0x286   : > { %v1464_v61 = vpop.f32.mrf.mxu1 }
 0x287   : > { %v1465_v62 = vadd.f32 %v2383_v8, %v1464_v61 }
 0x289   : > { %1531 = vst [vmem:[%s2388_s12 + $0x48] sm:$0xff] %v1465_v62 }
 0x28a   : > { %v1304_v12 = vpop.f32.mrf.mxu0 }
 0x28b   : > { %v1305_v0 = vadd.f32 %v2345_v54, %v1304_v12 }
 0x28d   : > { %v1344_v1 = vmax.f32 %v1305_v0, 0.0 }
 0x28e   : > { %v1467_v33 = vpop.f32.mrf.mxu1 }
 0x28f   : > { %v1362_v49 = vpack.c.bf16 %v1344_v1, %v1343_v21  ;;  %v1468_v2 = vadd.f32 %v2383_v8, %v1467_v33 }
 0x291   : > { %1532 = vst [vmem:[%s2388_s12 + $0x50] sm:$0xff] %v1468_v2  ;;  %1506 = vmatmul.bf16.gmra.mxu1 %v1362_v49 }
 0x292   : > { %v1307_v4 = vpop.f32.mrf.mxu0 }
 0x293   : > { %v1308_v10 = vadd.f32 %v2345_v54, %v1307_v4 }
 0x295   : > { %v1345_v16 = vmax.f32 %v1308_v10, 0.0 }
 0x296   : > { %v1469_v6 = vpop.f32.mrf.mxu1 }
 0x297   : > { %v1470_v15 = vadd.f32 %v2383_v8, %v1469_v6 }
 0x299   : > { %1533 = vst [vmem:[%s2388_s12 + $0x58] sm:$0xff] %v1470_v15 }
 0x29a   : > { %v1309_v11 = vpop.f32.mrf.mxu0 }
 0x29b   : > { %v1310_v14 = vadd.f32 %v2345_v54, %v1309_v11 }
 0x29d   : > { %v1346_v59 = vmax.f32 %v1310_v14, 0.0 }
 0x29e   : > { %v1472_v30 = vpop.f32.mrf.mxu1 }
 0x29f   : > { %v1363_v17 = vpack.c.bf16 %v1346_v59, %v1345_v16  ;;  %v1473_v44 = vadd.f32 %v2383_v8, %v1472_v30 }
 0x2a1   : > { %1534 = vst [vmem:[%s2388_s12 + $0x60] sm:$0xff] %v1473_v44  ;;  %1511 = vmatmul.bf16.gmra.mxu1 %v1363_v17 }
 0x2a6   : > { %v1474_v20 = vpop.f32.mrf.mxu1 }
 0x2a7   : > { %v1475_v23 = vadd.f32 %v2383_v8, %v1474_v20 }
 0x2a8   : > { %v1312_v24 = vpop.f32.mrf.mxu2 }
 0x2a9   : > { %1535 = vst [vmem:[%s2388_s12 + $0x68] sm:$0xff] %v1475_v23  ;;  %v1313_v51 = vadd.f32 %v2345_v54, %v1312_v24 }
 0x2ab   : > { %v1347_v43 = vmax.f32 %v1313_v51, 0.0 }
 0x2ae   : > { %v1477_v25 = vpop.f32.mrf.mxu1 }
 0x2af   : > { %v1478_v26 = vadd.f32 %v2383_v8, %v1477_v25 }
 0x2b0   : > { %v1314_v3 = vpop.f32.mrf.mxu2 }
 0x2b1   : > { %1536 = vst [vmem:[%s2388_s12 + $0x70] sm:$0xff] %v1478_v26  ;;  %v1315_v27 = vadd.f32 %v2345_v54, %v1314_v3 }
 0x2b3   : > { %v1348_v28 = vmax.f32 %v1315_v27, 0.0 }
 0x2b5   : > { %v1364_v29 = vpack.c.bf16 %v1348_v28, %v1347_v43 }
 0x2b6   : > { %v1479_v31 = vpop.f32.mrf.mxu1 }
 0x2b7   : > { %v1480_v9 = vadd.f32 %v2383_v8, %v1479_v31  ;;  %1516 = vmatmul.bf16.gmra.mxu1 %v1364_v29 }
 0x2b9   : > { %1537 = vst [vmem:[%s2388_s12 + $0x78] sm:$0xff] %v1480_v9 }
 0x2be   : > { %v1482_v34 = vpop.f32.mrf.mxu1 }
 0x2bf   : > { %v1483_v5 = vadd.f32 %v2383_v8, %v1482_v34 }
 0x2c1   : > { %1538 = vst [vmem:[%s2388_s12 + $0x80] sm:$0xff] %v1483_v5 }
 0x2c6   : > { %v1484_v35 = vpop.f32.mrf.mxu1 }
 0x2c7   : > { %v1485_v48 = vadd.f32 %v2383_v8, %v1484_v35 }
 0x2c9   : > { %1539 = vst [vmem:[%s2388_s12 + $0x88] sm:$0xff] %v1485_v48 }
 0x2ce   : > { %v1487_v54 = vpop.f32.mrf.mxu1 }
 0x2cf   : > { %v1488_v18 = vadd.f32 %v2383_v8, %v1487_v54 }
 0x2d1   : > { %1540 = vst [vmem:[%s2388_s12 + $0x90] sm:$0xff] %v1488_v18 }
 0x2d6   : > { %v1489_v36 = vpop.f32.mrf.mxu1 }
 0x2d7   : > { %v1490_v22 = vadd.f32 %v2383_v8, %v1489_v36 }
 0x2d9   : > { %1541 = vst [vmem:[%s2388_s12 + $0x98] sm:$0xff] %v1490_v22 }
 0x2de   : > { %v1492_v37 = vpop.f32.mrf.mxu1 }
 0x2df   : > { %v1493_v38 = vadd.f32 %v2383_v8, %v1492_v37 }
 0x2e1   : > { %1542 = vst [vmem:[%s2388_s12 + $0xa0] sm:$0xff] %v1493_v38 }
 0x2e6   : > { %v1494_v40 = vpop.f32.mrf.mxu1 }
 0x2e7   : > { %v1495_v41 = vadd.f32 %v2383_v8, %v1494_v40 }
 0x2e9   : > { %1543 = vst [vmem:[%s2388_s12 + $0xa8] sm:$0xff] %v1495_v41 }
 0x2ee   : > { %v1497_v53 = vpop.f32.mrf.mxu1 }
 0x2ef   : > { %v1498_v19 = vadd.f32 %v2383_v8, %v1497_v53 }
 0x2f1   : > { %1544 = vst [vmem:[%s2388_s12 + $0xb0] sm:$0xff] %v1498_v19 }
 0x2f6   : > { %v1499_v42 = vpop.f32.mrf.mxu1 }
 0x2f7   : > { %v1500_v39 = vadd.f32 %v2383_v8, %v1499_v42 }
 0x2f9   : > { %1545 = vst [vmem:[%s2388_s12 + $0xb8] sm:$0xff] %v1500_v39 }
 0x2fe   : > { %v1502_v13 = vpop.f32.mrf.mxu1 }
 0x2ff   : > { %v1503_v7 = vadd.f32 %v2383_v8, %v1502_v13 }
 0x301   : > { %1546 = vst [vmem:[%s2388_s12 + $0xc0] sm:$0xff] %v1503_v7 }
 0x306   : > { %v1504_v45 = vpop.f32.mrf.mxu1 }
 0x307   : > { %v1505_v46 = vadd.f32 %v2383_v8, %v1504_v45 }
 0x309   : > { %1547 = vst [vmem:[%s2388_s12 + $0xc8] sm:$0xff] %v1505_v46 }
 0x30e   : > { %v1507_v50 = vpop.f32.mrf.mxu1 }
 0x30f   : > { %v1508_v52 = vadd.f32 %v2383_v8, %v1507_v50 }
 0x311   : > { %1548 = vst [vmem:[%s2388_s12 + $0xd0] sm:$0xff] %v1508_v52 }
 0x316   : > { %v1509_v55 = vpop.f32.mrf.mxu1 }
 0x317   : > { %v1510_v56 = vadd.f32 %v2383_v8, %v1509_v55 }
 0x319   : > { %1549 = vst [vmem:[%s2388_s12 + $0xd8] sm:$0xff] %v1510_v56 }
 0x31e   : > { %v1512_v57 = vpop.f32.mrf.mxu1 }
 0x31f   : > { %v1513_v47 = vadd.f32 %v2383_v8, %v1512_v57 }
 0x321   : > { %1550 = vst [vmem:[%s2388_s12 + $0xe0] sm:$0xff] %v1513_v47 }
 0x326   : > { %v1514_v58 = vpop.f32.mrf.mxu1 }
 0x327   : > { %v1515_v32 = vadd.f32 %v2383_v8, %v1514_v58 }
 0x329   : > { %1551 = vst [vmem:[%s2388_s12 + $0xe8] sm:$0xff] %v1515_v32 }
 0x334   : > { %v1517_v60 = vpop.f32.mrf.mxu1 }
 0x335   : > { %v1518_v61 = vadd.f32 %v2383_v8, %v1517_v60 }
 0x337   : > { %1552 = vst [vmem:[%s2388_s12 + $0xf0] sm:$0xff] %v1518_v61 }
 0x33c   : > { %v1519_v62 = vpop.f32.mrf.mxu1 }
 0x33d   : > { %v1520_v63 = vadd.f32 %v2383_v8, %v1519_v62 }
 0x33f   : > { %1553 = vst [vmem:[%s2388_s12 + $0xf8] sm:$0xff] %v1520_v63 }
 0x340 PF: > { %s19_s30 = sadd.s32 1, %s1942_s30  }
 0x341   : > { %p16_p4 = scmp.ge.s32.totalorder %s19_s30, 4  }
 0x343   :  { %18 = sbr.rel (!%p16_p4) target bundleno = 1 (0x1), region = 86 }

</bundles_post_ra>
